<compile_context>
chip_gen: v7x
topology: tpu7x:2x2x1
jax: 0.10.0
libtpu: 0.0.40
codegen_flags: <defaults>
</compile_context>

<pallas_src>
import jax
import jax.numpy as jnp
import numpy as np
from jax.experimental import pallas as pl
from jax.experimental.pallas import tpu as pltpu

F_IN = 32        # features_in
F_OUT = 32       # features_out
NUM_FILT = 8     # num_filtrations
NUM_CF = 3       # num_coord_funs per coordinate-function type
FILT_HID = 24    # filtration_hidden
C24 = NUM_FILT * NUM_CF   # 24 coord columns per coord-fun type (per node)

P = 4            # nodes packed per 128-lane row
SEC = 32         # lanes per packed node section (24 used, 8 zero padding)
LANES = P * SEC  # 128

# packed bf16 weight slab row layout (all sections 128-row / 16-row aligned)
ROW_W1 = 0                    # [128,128] blockdiag4(pad32(w1 [32,24]))
ROW_W2E = 128                 # [128,128] blockdiag4(pad32(w2 @ E [24,24]))
ROW_WOUT = 256                # [128,128] blockdiag4(wout_x [32,32])
ROW_WC = 384                  # 4 x [128,128] blockdiag4(pad32(wc [24,32]))
PW_ROWS = ROW_WC + 4 * 128    # 896


def topology_kernel(scal_ref, x_ref, pv_ref, pw_ref, o_ref):
    x = x_ref[...]                                          # [TN,128] f32
    xb = x.astype(jnp.bfloat16)

    # ---- packed bf16 weights (static, aligned row slices) ----
    w1   = pw_ref[ROW_W1:ROW_W1 + LANES, :]                 # [128,128]
    w2e  = pw_ref[ROW_W2E:ROW_W2E + LANES, :]
    wout = pw_ref[ROW_WOUT:ROW_WOUT + LANES, :]
    wct  = pw_ref[ROW_WC + 0 * LANES:ROW_WC + 1 * LANES, :]
    wcg  = pw_ref[ROW_WC + 1 * LANES:ROW_WC + 2 * LANES, :]
    wcl  = pw_ref[ROW_WC + 2 * LANES:ROW_WC + 3 * LANES, :]
    wcr  = pw_ref[ROW_WC + 3 * LANES:ROW_WC + 4 * LANES, :]

    # ---- packed f32 biases / per-lane coordinate-function vectors ----
    b1_v   = pv_ref[0:1, :]                                 # [1,128]
    b2e_v  = pv_ref[1:2, :]
    bout_v = pv_ref[2:3, :]
    tri_t  = pv_ref[3:4, :]
    gau_c  = pv_ref[4:5, :]
    gau_e  = pv_ref[5:6, :]
    lin_w  = pv_ref[6:7, :]
    lin_b  = pv_ref[7:8, :]
    rat_c  = pv_ref[8:9, :]

    a = scal_ref[0]          # -1 / sigma^2 (folded Gaussian quadratic coeff)
    r_abs = scal_ref[1]      # |r| of the RationalHat transform

    # ---- shared filtration MLP on lane-packed tiles (bf16 MXU, f32 acc) ----
    h = jnp.maximum(
        jnp.dot(xb, w1, preferred_element_type=jnp.float32) + b1_v, 0.0)
    # b[:, 32p + 3f + k] == filtration value f of node (4*row + p) (birth).
    # TODO(synk): the real persistent-homology pairing
    # (compute_persistence_homology_batched_mt, a CPU union-find C++ op) has no
    # Pallas equivalent; this uses the module's `fake` dim-0 persistence where
    # birth == death == vertex filtration value.
    b = jnp.dot(h.astype(jnp.bfloat16), w2e,
                preferred_element_type=jnp.float32) + b2e_v           # [TN,128]

    # ---- coordinate functions, all filtrations / all 4 nodes at once ----
    # Triangle_transform: relu(death - |t - birth|), death == birth
    tri = jnp.maximum(b - jnp.abs(tri_t - b), 0.0)
    # Gaussian_transform: exp(-||(b,d)-t||^2/(2 sigma^2)) = exp((a*b + c)*b + e)
    gau = jnp.exp((a * b + gau_c) * b + gau_e)
    # Line_transform: Linear(2, NUM_CF) applied to (b, d); weights pre-summed
    lin = b * lin_w + lin_b
    # RationalHat_transform (L1 norm over (b, d); d == b so n1 = 2|b - c|)
    n1 = 2.0 * jnp.abs(b - rat_c)
    rat = (pl.reciprocal(1.0 + n1, approx=True)
           - pl.reciprocal(1.0 + jnp.abs(r_abs - n1), approx=True))

    # ---- out = ReLU(concat(x, coord_activations) @ Wout + bout) as 5 dots ----
    acc = jnp.dot(xb, wout, preferred_element_type=jnp.float32) + bout_v
    acc = acc + jnp.dot(tri.astype(jnp.bfloat16), wct,
                        preferred_element_type=jnp.float32)
    acc = acc + jnp.dot(gau.astype(jnp.bfloat16), wcg,
                        preferred_element_type=jnp.float32)
    acc = acc + jnp.dot(lin.astype(jnp.bfloat16), wcl,
                        preferred_element_type=jnp.float32)
    acc = acc + jnp.dot(rat.astype(jnp.bfloat16), wcr,
                        preferred_element_type=jnp.float32)

    o_ref[...] = jnp.maximum(acc, 0.0)                      # final ReLU, f32


def _choose_tile_rows(rows):
    # Large tiles amortize the ~0.35us per-grid-step overhead (tile sweeps show
    # ~86% of roofline at 1024+ rows).  Keep >=2 grid steps whenever there is
    # enough work so the "parallel" axis can shard across both TCs on v7x.
    target = 1024                               # 1024 packed rows = 4096 nodes
    if rows >= 2 * target:
        return target
    if rows >= 16:
        half = -(-rows // 2)
        return -(-half // 8) * 8                # two even-ish 8-aligned tiles
    return 8


def _pack_params(params):
    """Host-side layout plumbing: block-diagonalize, lane-tile, fold constants."""
    (scal, w1, b1, w2, b2, tri_t, gau_t, lin_w, lin_b, rat_c,
     wout_x, wc_tri, wc_gau, wc_lin, wc_rat, bout) = params

    sigma = scal[0]
    r_abs = jnp.abs(scal[1])
    inv_s2 = 1.0 / (sigma * sigma)

    # 0/1 expansion matrix: coord column j carries filtration j // NUM_CF
    cols = jnp.arange(C24)
    E = jnp.zeros((NUM_FILT, C24), jnp.float32).at[cols // NUM_CF, cols].set(1.0)
    w2e = w2 @ E                                            # [24,24]
    b2e = b2 @ E                                            # [1,24]

    def pad_to(a, rows, lanes):
        return jnp.pad(a, ((0, rows - a.shape[0]), (0, lanes - a.shape[1])))

    def bd4(w, rows):
        # pad to [rows, SEC] then 4-way block-diagonal -> [4*rows, 128]
        return jnp.kron(jnp.eye(P, dtype=jnp.float32), pad_to(w, rows, SEC))

    pW = jnp.concatenate([
        bd4(w1, F_IN),                          # rows   0:128
        bd4(w2e, SEC),                          # rows 128:256
        bd4(wout_x, F_IN),                      # rows 256:384
        bd4(wc_tri.reshape(C24, F_OUT), SEC),   # rows 384:512
        bd4(wc_gau.reshape(C24, F_OUT), SEC),   # rows 512:640
        bd4(wc_lin.reshape(C24, F_OUT), SEC),   # rows 640:768
        bd4(wc_rat.reshape(C24, F_OUT), SEC),   # rows 768:896
    ], axis=0).astype(jnp.bfloat16)             # [896, 128] bf16 weight slab

    def lane_tile_sec(vrow):                    # [1,c<=32] -> [1,128]
        v = jnp.asarray(vrow, jnp.float32)
        return jnp.tile(jnp.pad(v, ((0, 0), (0, SEC - v.shape[1]))), (1, P))

    def lane_tile_cf(v3):                       # [3] -> [1,128], lane 32p+j -> v3[j%3]
        v24 = jnp.tile(jnp.asarray(v3, jnp.float32).reshape(1, NUM_CF),
                       (1, NUM_FILT))
        return lane_tile_sec(v24)

    # Gaussian fold: -((b-t1)^2+(b-t2)^2)/(2s^2) = a*b^2 + c*b + e
    t1, t2 = gau_t[0], gau_t[1]
    gau_c = (t1 + t2) * inv_s2
    gau_e = -(t1 * t1 + t2 * t2) * (0.5 * inv_s2)
    lin_ws = lin_w[0] + lin_w[1]                # birth == death -> merge weights

    pV = jnp.concatenate([
        lane_tile_sec(b1),                      # row 0
        lane_tile_sec(b2e),                     # row 1
        lane_tile_sec(bout),                    # row 2
        lane_tile_cf(tri_t[0]),                 # row 3
        lane_tile_cf(gau_c),                    # row 4
        lane_tile_cf(gau_e),                    # row 5
        lane_tile_cf(lin_ws),                   # row 6
        lane_tile_cf(lin_b[0]),                 # row 7
        lane_tile_cf(rat_c[0]),                 # row 8
        jnp.zeros((7, LANES), jnp.float32),     # pad to 16 rows
    ], axis=0)                                  # [16, 128] f32 vector slab

    scal2 = jnp.stack([-inv_s2, r_abs]).astype(jnp.float32)
    return scal2, pV, pW


def topology_layer(x, params):
    N = x.shape[0]
    scal2, pV, pW = _pack_params(params)

    rows = -(-N // P)
    tile_rows = _choose_tile_rows(rows)
    rows_pad = -(-rows // tile_rows) * tile_rows
    n_pad = rows_pad * P

    # pack 4 nodes per 128-lane row (pad tail nodes with zeros, sliced off later)
    xp = jnp.pad(x.astype(jnp.float32), ((0, n_pad - N), (0, 0)))
    xp = xp.reshape(rows_pad, P * F_IN)

    in_specs = [
        pl.BlockSpec(memory_space=pltpu.MemorySpace.SMEM),           # scalars
        pl.BlockSpec((tile_rows, P * F_IN), lambda i: (i, 0)),       # packed x
        pl.BlockSpec(pV.shape, lambda i: (0, 0)),                    # f32 vectors
        pl.BlockSpec(pW.shape, lambda i: (0, 0)),                    # bf16 weights
    ]

    out = pl.pallas_call(
        topology_kernel,
        out_shape=jax.ShapeDtypeStruct((rows_pad, P * F_OUT), jnp.float32),
        grid=(rows_pad // tile_rows,),
        in_specs=in_specs,
        out_specs=pl.BlockSpec((tile_rows, P * F_OUT), lambda i: (i, 0)),
        compiler_params=pltpu.CompilerParams(dimension_semantics=("parallel",)),
    )(scal2, xp, pV, pW)

    return out.reshape(n_pad, F_OUT)[:N]


def reference(x, params):
    """Pure-JAX reference of the same forward pass."""
    (scal, w1, b1, w2, b2, tri_t, gau_t, lin_w, lin_b, rat_c,
     wout_x, wc_tri, wc_gau, wc_lin, wc_rat, bout) = params
    sigma, r = scal[0], scal[1]
    h = jax.nn.relu(x @ w1 + b1)
    fv = h @ w2 + b2                                        # [N, F]
    b = fv[:, :, None]
    d = b
    tri = jax.nn.relu(d - jnp.abs(tri_t[0][None, None, :] - b))
    gau = jnp.exp(-((b - gau_t[0][None, None, :]) ** 2
                    + (d - gau_t[1][None, None, :]) ** 2) / (2.0 * sigma * sigma))
    lin = (b * lin_w[0][None, None, :] + d * lin_w[1][None, None, :]
           + lin_b[0][None, None, :])
    n1 = jnp.abs(b - rat_c[0][None, None, :]) + jnp.abs(d - rat_c[0][None, None, :])
    rat = 1.0 / (1.0 + n1) - 1.0 / (1.0 + jnp.abs(jnp.abs(r) - n1))
    out = x @ wout_x + bout
    out = out + jnp.einsum('nfk,fkc->nc', tri, wc_tri)
    out = out + jnp.einsum('nfk,fkc->nc', gau, wc_gau)
    out = out + jnp.einsum('nfk,fkc->nc', lin, wc_lin)
    out = out + jnp.einsum('nfk,fkc->nc', rat, wc_rat)
    return jax.nn.relu(out)


def make_params(key):
    ks = jax.random.split(key, 16)
    rnd = lambda k, s, scale=0.1: (scale * jax.random.normal(k, s)).astype(jnp.float32)
    w1 = rnd(ks[0], (F_IN, FILT_HID))
    b1 = rnd(ks[1], (1, FILT_HID))
    w2 = rnd(ks[2], (FILT_HID, NUM_FILT))
    b2 = rnd(ks[3], (1, NUM_FILT))
    tri_t = rnd(ks[4], (1, NUM_CF), 1.0)
    gau_t = rnd(ks[5], (2, NUM_CF), 1.0)
    lin_w = rnd(ks[6], (2, NUM_CF), 1.0)
    lin_b = rnd(ks[7], (1, NUM_CF), 1.0)
    rat_c = rnd(ks[8], (1, NUM_CF), 1.0)
    wout_x = rnd(ks[9], (F_IN, F_OUT))
    wc_tri = rnd(ks[10], (NUM_FILT, NUM_CF, F_OUT))
    wc_gau = rnd(ks[11], (NUM_FILT, NUM_CF, F_OUT))
    wc_lin = rnd(ks[12], (NUM_FILT, NUM_CF, F_OUT))
    wc_rat = rnd(ks[13], (NUM_FILT, NUM_CF, F_OUT))
    bout = rnd(ks[14], (1, F_OUT))
    scal = jnp.array([1.0, float(jax.random.normal(ks[15], ()))], dtype=jnp.float32)
    return (scal, w1, b1, w2, b2, tri_t, gau_t, lin_w, lin_b, rat_c,
            wout_x, wc_tri, wc_gau, wc_lin, wc_rat, bout)


if __name__ == "__main__":
    key = jax.random.PRNGKey(0)
    k_x, k_p = jax.random.split(key)
    N = 512  # number of graph nodes (small demo shape; 128 packed rows, grid=2)
    x = jax.random.normal(k_x, (N, F_IN), dtype=jnp.float32)
    params = make_params(k_p)

    out = jax.block_until_ready(topology_layer(x, params))

    out_ref = jax.block_until_ready(reference(x, params))
    # tolerance covers bf16 MXU operands + EUP approximate reciprocals
    np.testing.assert_allclose(np.asarray(out), np.asarray(out_ref),
                               rtol=2e-2, atol=3e-2)
    print("KERNEL_OK")
</pallas_src>

<mosaic_0001>
module attributes {stable_mosaic.version = 11 : i64} {
  func.func @topology_kernel(%arg0: i32, %arg1: memref<2xf32, #tpu.memory_space<smem>>, %arg2: memref<64x128xf32, #tpu.memory_space<vmem>>, %arg3: memref<16x128xf32, #tpu.memory_space<vmem>>, %arg4: memref<896x128xbf16, #tpu.memory_space<vmem>>, %arg5: memref<64x128xf32, #tpu.memory_space<vmem>>) attributes {dimension_semantics = [#tpu.dimension_semantics<parallel>], iteration_bounds = array<i64: 2>, scalar_prefetch = 0 : i64, scratch_operands = 0 : i64, tpu.core_type = #tpu.core_type<tc>, window_params = [{transform_indices = @transform_0, window_bounds = array<i64: 2>}, {transform_indices = @transform_1, window_bounds = array<i64: 64, 128>}, {pipeline_mode = #tpu.pipeline_mode<synchronous>, transform_indices = @transform_2, window_bounds = array<i64: 16, 128>}, {pipeline_mode = #tpu.pipeline_mode<synchronous>, transform_indices = @transform_3, window_bounds = array<i64: 896, 128>}, {transform_indices = @transform_4, window_bounds = array<i64: 64, 128>}]} {
    %c0 = arith.constant 0 : index
    %c0_0 = arith.constant 0 : index
    %0 = vector.load %arg2[%c0, %c0_0] : memref<64x128xf32, #tpu.memory_space<vmem>>, vector<64x128xf32>
    %1 = arith.truncf %0 : vector<64x128xf32> to vector<64x128xbf16>
    %c0_1 = arith.constant 0 : index
    %c0_2 = arith.constant 0 : index
    %2 = vector.load %arg4[%c0_1, %c0_2] : memref<896x128xbf16, #tpu.memory_space<vmem>>, vector<128x128xbf16>
    %c128 = arith.constant 128 : index
    %c0_3 = arith.constant 0 : index
    %3 = vector.load %arg4[%c128, %c0_3] : memref<896x128xbf16, #tpu.memory_space<vmem>>, vector<128x128xbf16>
    %c256 = arith.constant 256 : index
    %c0_4 = arith.constant 0 : index
    %4 = vector.load %arg4[%c256, %c0_4] : memref<896x128xbf16, #tpu.memory_space<vmem>>, vector<128x128xbf16>
    %c384 = arith.constant 384 : index
    %c0_5 = arith.constant 0 : index
    %5 = vector.load %arg4[%c384, %c0_5] : memref<896x128xbf16, #tpu.memory_space<vmem>>, vector<128x128xbf16>
    %c512 = arith.constant 512 : index
    %c0_6 = arith.constant 0 : index
    %6 = vector.load %arg4[%c512, %c0_6] : memref<896x128xbf16, #tpu.memory_space<vmem>>, vector<128x128xbf16>
    %c640 = arith.constant 640 : index
    %c0_7 = arith.constant 0 : index
    %7 = vector.load %arg4[%c640, %c0_7] : memref<896x128xbf16, #tpu.memory_space<vmem>>, vector<128x128xbf16>
    %c768 = arith.constant 768 : index
    %c0_8 = arith.constant 0 : index
    %8 = vector.load %arg4[%c768, %c0_8] : memref<896x128xbf16, #tpu.memory_space<vmem>>, vector<128x128xbf16>
    %c0_9 = arith.constant 0 : index
    %c0_10 = arith.constant 0 : index
    %9 = vector.load %arg3[%c0_9, %c0_10] : memref<16x128xf32, #tpu.memory_space<vmem>>, vector<1x128xf32>
    %c1 = arith.constant 1 : index
    %c0_11 = arith.constant 0 : index
    %10 = vector.load %arg3[%c1, %c0_11] : memref<16x128xf32, #tpu.memory_space<vmem>>, vector<1x128xf32>
    %c2 = arith.constant 2 : index
    %c0_12 = arith.constant 0 : index
    %11 = vector.load %arg3[%c2, %c0_12] : memref<16x128xf32, #tpu.memory_space<vmem>>, vector<1x128xf32>
    %c3 = arith.constant 3 : index
    %c0_13 = arith.constant 0 : index
    %12 = vector.load %arg3[%c3, %c0_13] : memref<16x128xf32, #tpu.memory_space<vmem>>, vector<1x128xf32>
    %c4 = arith.constant 4 : index
    %c0_14 = arith.constant 0 : index
    %13 = vector.load %arg3[%c4, %c0_14] : memref<16x128xf32, #tpu.memory_space<vmem>>, vector<1x128xf32>
    %c5 = arith.constant 5 : index
    %c0_15 = arith.constant 0 : index
    %14 = vector.load %arg3[%c5, %c0_15] : memref<16x128xf32, #tpu.memory_space<vmem>>, vector<1x128xf32>
    %c6 = arith.constant 6 : index
    %c0_16 = arith.constant 0 : index
    %15 = vector.load %arg3[%c6, %c0_16] : memref<16x128xf32, #tpu.memory_space<vmem>>, vector<1x128xf32>
    %c7 = arith.constant 7 : index
    %c0_17 = arith.constant 0 : index
    %16 = vector.load %arg3[%c7, %c0_17] : memref<16x128xf32, #tpu.memory_space<vmem>>, vector<1x128xf32>
    %c8 = arith.constant 8 : index
    %c0_18 = arith.constant 0 : index
    %17 = vector.load %arg3[%c8, %c0_18] : memref<16x128xf32, #tpu.memory_space<vmem>>, vector<1x128xf32>
    %c0_19 = arith.constant 0 : index
    %18 = memref.load %arg1[%c0_19] : memref<2xf32, #tpu.memory_space<smem>>
    %c1_20 = arith.constant 1 : index
    %19 = memref.load %arg1[%c1_20] : memref<2xf32, #tpu.memory_space<smem>>
    %cst = arith.constant dense<0.000000e+00> : vector<64x128xf32>
    %20 = tpu.matmul %1, %2, %cst {dimension_numbers = #tpu.dot_dimension_numbers<[1], [0], [0], [1], [0, 0, 1, 1], [], []>} : vector<64x128xbf16>, vector<128x128xbf16>, vector<64x128xf32> -> vector<64x128xf32>
    %21 = vector.broadcast %9 : vector<1x128xf32> to vector<64x128xf32>
    %22 = arith.addf %20, %21 : vector<64x128xf32>
    %cst_21 = arith.constant 0.000000e+00 : f32
    %23 = vector.broadcast %cst_21 : f32 to vector<64x128xf32>
    %24 = arith.maximumf %22, %23 : vector<64x128xf32>
    %25 = arith.truncf %24 : vector<64x128xf32> to vector<64x128xbf16>
    %cst_22 = arith.constant dense<0.000000e+00> : vector<64x128xf32>
    %26 = tpu.matmul %25, %3, %cst_22 {dimension_numbers = #tpu.dot_dimension_numbers<[1], [0], [0], [1], [0, 0, 1, 1], [], []>} : vector<64x128xbf16>, vector<128x128xbf16>, vector<64x128xf32> -> vector<64x128xf32>
    %27 = vector.broadcast %10 : vector<1x128xf32> to vector<64x128xf32>
    %28 = arith.addf %26, %27 : vector<64x128xf32>
    %29 = vector.broadcast %12 : vector<1x128xf32> to vector<64x128xf32>
    %30 = arith.subf %29, %28 : vector<64x128xf32>
    %31 = math.absf %30 : vector<64x128xf32>
    %32 = arith.subf %28, %31 : vector<64x128xf32>
    %cst_23 = arith.constant 0.000000e+00 : f32
    %33 = vector.broadcast %cst_23 : f32 to vector<64x128xf32>
    %34 = arith.maximumf %32, %33 : vector<64x128xf32>
    %35 = vector.broadcast %18 : f32 to vector<64x128xf32>
    %36 = arith.mulf %35, %28 : vector<64x128xf32>
    %37 = vector.broadcast %13 : vector<1x128xf32> to vector<64x128xf32>
    %38 = arith.addf %36, %37 : vector<64x128xf32>
    %39 = arith.mulf %38, %28 : vector<64x128xf32>
    %40 = vector.broadcast %14 : vector<1x128xf32> to vector<64x128xf32>
    %41 = arith.addf %39, %40 : vector<64x128xf32>
    %42 = math.exp %41 : vector<64x128xf32>
    %43 = vector.broadcast %15 : vector<1x128xf32> to vector<64x128xf32>
    %44 = arith.mulf %28, %43 : vector<64x128xf32>
    %45 = vector.broadcast %16 : vector<1x128xf32> to vector<64x128xf32>
    %46 = arith.addf %44, %45 : vector<64x128xf32>
    %47 = vector.broadcast %17 : vector<1x128xf32> to vector<64x128xf32>
    %48 = arith.subf %28, %47 : vector<64x128xf32>
    %49 = math.absf %48 : vector<64x128xf32>
    %cst_24 = arith.constant 2.000000e+00 : f32
    %50 = vector.broadcast %cst_24 : f32 to vector<64x128xf32>
    %51 = arith.mulf %50, %49 : vector<64x128xf32>
    %cst_25 = arith.constant 1.000000e+00 : f32
    %52 = vector.broadcast %cst_25 : f32 to vector<64x128xf32>
    %53 = arith.addf %52, %51 : vector<64x128xf32>
    %54 = tpu.reciprocal %53 {approx = true} : vector<64x128xf32> -> vector<64x128xf32>
    %55 = vector.broadcast %19 : f32 to vector<64x128xf32>
    %56 = arith.subf %55, %51 : vector<64x128xf32>
    %57 = math.absf %56 : vector<64x128xf32>
    %cst_26 = arith.constant 1.000000e+00 : f32
    %58 = vector.broadcast %cst_26 : f32 to vector<64x128xf32>
    %59 = arith.addf %58, %57 : vector<64x128xf32>
    %60 = tpu.reciprocal %59 {approx = true} : vector<64x128xf32> -> vector<64x128xf32>
    %61 = arith.subf %54, %60 : vector<64x128xf32>
    %cst_27 = arith.constant dense<0.000000e+00> : vector<64x128xf32>
    %62 = tpu.matmul %1, %4, %cst_27 {dimension_numbers = #tpu.dot_dimension_numbers<[1], [0], [0], [1], [0, 0, 1, 1], [], []>} : vector<64x128xbf16>, vector<128x128xbf16>, vector<64x128xf32> -> vector<64x128xf32>
    %63 = vector.broadcast %11 : vector<1x128xf32> to vector<64x128xf32>
    %64 = arith.addf %62, %63 : vector<64x128xf32>
    %65 = arith.truncf %34 : vector<64x128xf32> to vector<64x128xbf16>
    %cst_28 = arith.constant dense<0.000000e+00> : vector<64x128xf32>
    %66 = tpu.matmul %65, %5, %cst_28 {dimension_numbers = #tpu.dot_dimension_numbers<[1], [0], [0], [1], [0, 0, 1, 1], [], []>} : vector<64x128xbf16>, vector<128x128xbf16>, vector<64x128xf32> -> vector<64x128xf32>
    %67 = arith.addf %64, %66 : vector<64x128xf32>
    %68 = arith.truncf %42 : vector<64x128xf32> to vector<64x128xbf16>
    %cst_29 = arith.constant dense<0.000000e+00> : vector<64x128xf32>
    %69 = tpu.matmul %68, %6, %cst_29 {dimension_numbers = #tpu.dot_dimension_numbers<[1], [0], [0], [1], [0, 0, 1, 1], [], []>} : vector<64x128xbf16>, vector<128x128xbf16>, vector<64x128xf32> -> vector<64x128xf32>
    %70 = arith.addf %67, %69 : vector<64x128xf32>
    %71 = arith.truncf %46 : vector<64x128xf32> to vector<64x128xbf16>
    %cst_30 = arith.constant dense<0.000000e+00> : vector<64x128xf32>
    %72 = tpu.matmul %71, %7, %cst_30 {dimension_numbers = #tpu.dot_dimension_numbers<[1], [0], [0], [1], [0, 0, 1, 1], [], []>} : vector<64x128xbf16>, vector<128x128xbf16>, vector<64x128xf32> -> vector<64x128xf32>
    %73 = arith.addf %70, %72 : vector<64x128xf32>
    %74 = arith.truncf %61 : vector<64x128xf32> to vector<64x128xbf16>
    %cst_31 = arith.constant dense<0.000000e+00> : vector<64x128xf32>
    %75 = tpu.matmul %74, %8, %cst_31 {dimension_numbers = #tpu.dot_dimension_numbers<[1], [0], [0], [1], [0, 0, 1, 1], [], []>} : vector<64x128xbf16>, vector<128x128xbf16>, vector<64x128xf32> -> vector<64x128xf32>
    %76 = arith.addf %73, %75 : vector<64x128xf32>
    %cst_32 = arith.constant 0.000000e+00 : f32
    %77 = vector.broadcast %cst_32 : f32 to vector<64x128xf32>
    %78 = arith.maximumf %76, %77 : vector<64x128xf32>
    %c0_33 = arith.constant 0 : index
    %c0_34 = arith.constant 0 : index
    %79 = vector.load %arg5[%c0_33, %c0_34] : memref<64x128xf32, #tpu.memory_space<vmem>>, vector<64x128xf32>
    tpu.vector_store %arg5[%c0_33, %c0_34], %78 {strides = array<i32>} : memref<64x128xf32, #tpu.memory_space<vmem>>, vector<64x128xf32>,
    return
  }
  func.func @transform_0(%arg0: i32) -> i32 {
    %c0_i32 = arith.constant 0 : i32
    %c0_i32_0 = arith.constant 0 : i32
    return %c0_i32 : i32
  }
  func.func @transform_1(%arg0: i32) -> (i32, i32) {
    %c0_i32 = arith.constant 0 : i32
    %c0_i32_0 = arith.constant 0 : i32
    return %arg0, %c0_i32 : i32, i32
  }
  func.func @transform_2(%arg0: i32) -> (i32, i32) {
    %c0_i32 = arith.constant 0 : i32
    %c0_i32_0 = arith.constant 0 : i32
    %c0_i32_1 = arith.constant 0 : i32
    return %c0_i32, %c0_i32_0 : i32, i32
  }
  func.func @transform_3(%arg0: i32) -> (i32, i32) {
    %c0_i32 = arith.constant 0 : i32
    %c0_i32_0 = arith.constant 0 : i32
    %c0_i32_1 = arith.constant 0 : i32
    return %c0_i32, %c0_i32_0 : i32, i32
  }
  func.func @transform_4(%arg0: i32) -> (i32, i32) {
    %c0_i32 = arith.constant 0 : i32
    %c0_i32_0 = arith.constant 0 : i32
    return %arg0, %c0_i32 : i32, i32
  }
}

</mosaic_0001>

<bundles_post_ra>
// kernel: tpu_custom_call.1
= control target key start
LH: loop header
LB: loop body
LE: loop exit
PB: predicated region body
PF: predicated region fallthrough
CT: control target
= control target key end

     0   :  { %9 = vsyncpa [#allocation5], 0  ;;  %s2954_s0 = inlined_call_operand.hbm [shape: f32[2], index: 0, kind: input, shape index: {}]   ;;  %s2955_s1 = inlined_call_operand.hbm [shape: f32[128,128], index: 1, kind: input, shape index: {}]   ;;  %s2956_s2 = inlined_call_operand.hbm [shape: f32[16,128], index: 2, kind: input, shape index: {}]   ;;  %s2957_s3 = inlined_call_operand.hbm [shape: bf16[896,128], index: 3, kind: input, shape index: {}]   ;;  %s2958_s4 = inlined_call_operand.hbm [shape: f32[128,128], index: 4, kind: output, shape index: {}]  }
   0x1   :  { %10 = vsyncpa [#allocation3], 0 }
   0x2   :  { %12 = vsyncpa [#allocation3 + $0x1], 0 }
   0x3   :  { %13 = vsyncpa [#allocation8], 0 }
   0x4   :  { %14 = vsyncpa [#allocation4], 0 }
   0x5   :  { %16 = vsyncpa [#allocation4 + $0x1], 0  ;;  %s2388_s15 = smov 0   ;;  %s2390_s16 = smov 0  }
   0x6   :  { %s2392_s17 = smov 0   ;;  %s2394_s18 = smov 0  }
   0x7 LB: > { %s2409_s19 = sadd.s32 4294967295, %s2350_s18   ;;  %s1594_s20 = sadd.s32 4294967294, %s2350_s18   ;;  %s2350_s18 = sphi %s2394_s18, %s2981_s18   ;;  %s2346_s17 = sphi %s2392_s17, %s2980_s17   ;;  %s2342_s16 = sphi %s2390_s16, %s2979_s16   ;;  %s2338_s15 = sphi %s2388_s15, %s2978_s15  }
   0x8   : > { %p63_p0 = scmp.ne.s32.totalorder %s2342_s16, %s2338_s15  ;;  %p2959_p1 = scmp.eq.s32.totalorder %s2409_s19, 0 }
   0x9   : > { %p135_p3 = scmp.eq.s32.totalorder %s1594_s20, 1  ;;  %p1595_p5 = scmp.ge.s32.totalorder %s2350_s18, 1 }
   0xa   : > { %p2418_p4 = por %p2959_p1, %p63_p0  ;;  %p142_p7 = scmp.lt.s32.totalorder %s2350_s18, 3 }
   0xb   : > { %p2423_p6 = por %p135_p3, %p63_p0  ;;  %s2352_s24 = smov [#allocation7]  }
   0xc   : > { %s2962_s21 = scalar_select %p2418_p4, 1, 0 }
   0xd   : > { %s2963_s22 = scalar_select %p2423_p6, 1, 0 }
   0xe   : > { %p2428_p8 = pnand %p1595_p5, %p142_p7  ;;  %s163_s25 = sshll.u32 %s2352_s24, 4  ;;  %s2432_s25 = int_to_ptr.vmem [resolvable:$true] %s163_s25 }
   0xf   : > { %s2353_s27 = smov [#allocation9]   ;;  %s2177_s5 = scalar_lea.hbm %s2956_s2, 256 }
  0x10   : > { %p2006_p9 = pneg %p2428_p8  ;;  %s176_s28 = sshll.u32 %s2353_s27, 4  ;;  %s2443_s28 = int_to_ptr.vmem [resolvable:$true] %s176_s28 }
  0x11   : > { %p2178_p12 = scmp.ne.s32.totalorder %s2956_s2, %s2177_s5  ;;  %p2184_p5 = scmp.lt.u32.totalorder %s2177_s5, %s2956_s2 }
  0x12   : > { %p2439_p11 = pnand %p2006_p9, %p2959_p1 }
  0x14   : > { %p2453_p13 = pneg %p2439_p11 }
  0x16   : > { %p2180_p0 = pnand %p2453_p13, %p2178_p12 }
  0x18   : > { %p2181_p3 = pneg %p2180_p0 }
  0x1a   : > { %p2186_p7 = pnand %p2184_p5, %p2181_p3 }
  0x1c   : > { %2189 = shalt.err (!%p2186_p7)
}
  0x1d   : > { %s2190_s11 = scalar_lea.vmem %s2432_s25, 256  ;;  %p2198_p2 = scmp.lt.s32.totalorder %s2432_s25, %s2432_s25 }
  0x1e   : > { %p2191_p9 = scmp.ne.s32.totalorder %s2432_s25, %s2190_s11  ;;  %p2199_p6 = scmp.lt.s32.totalorder %s2190_s11, %s2190_s11 }
  0x20   : > { %p2193_p10 = pnand %p2191_p9, %p2453_p13  ;;  %p2200_p12 = por %p2199_p6, %p2198_p2 }
  0x22   : > { %p2194_p1 = pneg %p2193_p10 }
  0x24   : > { %p2201_p0 = pnand %p2200_p12, %p2194_p1 }
  0x26   : > { %2204 = shalt.err (!%p2201_p0)
}
  0x27   : > { %s2354_s12 = smov 128   ;;  %s2355_s13 = smov 8  }
  0x28   : > { %2012 = dma.hbm_to_vmem [thread:$0]  (!%p2439_p11), %s2956_s2, 256, %s2432_s25, [#allocation8], %s2354_s12, %s2354_s12, %s2355_s13  }
  0x29   : > { %s2205_s29 = scalar_lea.hbm %s2954_s0, 16 }
  0x2a   : > { %p2206_p1 = scmp.ne.s32.totalorder %s2954_s0, %s2205_s29  ;;  %p2212_p10 = scmp.lt.u32.totalorder %s2205_s29, %s2954_s0 }
  0x2c   : > { %p2208_p2 = pnand %p2206_p1, %p2453_p13 }
  0x2e   : > { %p2209_p6 = pneg %p2208_p2 }
  0x30   : > { %p2214_p3 = pnand %p2212_p10, %p2209_p6 }
  0x32   : > { %2217 = shalt.err (!%p2214_p3)
}
  0x33   : > { %s2356_s9 = smov [#allocation2]   ;;  %s2218_s20 = scalar_lea.hbm %s2957_s3, 7168 }
  0x34   : > { %2009 = dma.hbm_to_smem (!%p2439_p11), %s2954_s0, 16, %s2356_s9, [#allocation5]  }
  0x35   : > { %p2219_p5 = scmp.ne.s32.totalorder %s2957_s3, %s2218_s20  ;;  %p2225_p12 = scmp.lt.u32.totalorder %s2218_s20, %s2957_s3 }
  0x37   : > { %p2221_p7 = pnand %p2219_p5, %p2453_p13 }
  0x39   : > { %p2222_p9 = pneg %p2221_p7 }
  0x3b   : > { %p2227_p0 = pnand %p2225_p12, %p2222_p9 }
  0x3d   : > { %2230 = shalt.err (!%p2227_p0)
}
  0x3e   : > { %s2231_s5 = scalar_lea.vmem %s2443_s28, 7168  ;;  %p2239_p10 = scmp.lt.s32.totalorder %s2443_s28, %s2443_s28 }
  0x3f   : > { %p2232_p1 = scmp.ne.s32.totalorder %s2443_s28, %s2231_s5  ;;  %p2240_p3 = scmp.lt.s32.totalorder %s2231_s5, %s2231_s5 }
  0x41   : > { %p2234_p2 = pnand %p2232_p1, %p2453_p13  ;;  %p2241_p5 = por %p2240_p3, %p2239_p10 }
  0x43   : > { %p2235_p6 = pneg %p2234_p2 }
  0x45   : > { %p2242_p7 = pnand %p2241_p5, %p2235_p6 }
  0x47   : > { %2245 = shalt.err (!%p2242_p7)
}
  0x48   : > { %s2357_s6 = smov 64   ;;  %s2358_s8 = smov 4  }
  0x49   : > { %2015 = dma.hbm_to_vmem [thread:$0]  (!%p2439_p11), %s2957_s3, 7168, %s2443_s28, [#allocation8], %s2357_s6, %s2357_s6, %s2358_s8  }
  0x4a   : > { %s2517_s25 = sadd.s32 1, %s2350_s18   ;;  %s50_s11 = sadd.s32 1, %s2346_s17 }
  0x4b   : > { %s47_s10 = ssub.s32 %s2350_s18, %s2517_s25  ;;  %p57_p9 = scmp.ne.s32.totalorder %s2346_s17, %s2342_s16 }
  0x4c   : > { %p48_p13 = scmp.eq.s32.totalorder %s47_s10, 0  ;;  %p58_p12 = scmp.eq.s32.totalorder %s2350_s18, 0 }
  0x4d   : > { %p2027_p0 = scmp.lt.s32.totalorder %s2350_s18, 2  ;;  %p2967_p2 = scmp.eq.s32.totalorder %s2409_s19, 1 }
  0x4e   : > { %s2527_s14 = scalar_select %p48_p13, %s2346_s17, %s50_s11  }
  0x4f   : > { %p59_p1 = por %p58_p12, %p57_p9  ;;  %p2531_p6 = por %p2967_p2, %p57_p9 }
  0x50   : > { %s190_s26 = sand.u32 1, %s2346_s17   ;;  %s1680_s24 = sshll.u32 %s2350_s18, 10 }
  0x51   : > { %s2968_s20 = scalar_select %p2531_p6, 1, 0 }
  0x52   : > { %s1600_s28 = sshll.u32 %s190_s26, 6  ;;  %s2540_s30 = scalar_lea.hbm %s2955_s1, %s1680_s24 }
  0x53   : > { %s194_s5 = scalar_lea.vmem [#allocation6], %s1600_s28  ;;  %p2542_p11 = pnand %p2027_p0, %p59_p1 }
  0x54   : > { %s201_s6 = sshll.u32 %s194_s5, 4  ;;  %s2548_s7 = scalar_lea.sflag [#allocation3], %s190_s26  ;;  %s2546_s6 = int_to_ptr.vmem [resolvable:$true] %s201_s6 }
  0x55   : > { %s2246_s9 = scalar_lea.hbm %s2540_s30, 1024  ;;  %p2248_p3 = pneg %p2542_p11 }
  0x56   : > { %p2247_p10 = scmp.ne.s32.totalorder %s2540_s30, %s2246_s9  ;;  %s2251_s24 = scalar_lea.hbm %s2955_s1, 2048 }
  0x57   : > { %p2252_p13 = scmp.lt.u32.totalorder %s2540_s30, %s2955_s1  ;;  %p2253_p9 = scmp.lt.u32.totalorder %s2251_s24, %s2246_s9 }
  0x58   : > { %p2249_p5 = pnand %p2248_p3, %p2247_p10  ;;  %p2255_p0 = scmp.lt.u32.totalorder %s2246_s9, %s2540_s30 }
  0x59   : > { %p2254_p12 = por %p2253_p9, %p2252_p13 }
  0x5a   : > { %p2250_p7 = pneg %p2249_p5 }
  0x5b   : > { %p2256_p1 = por %p2255_p0, %p2254_p12 }
  0x5d   : > { %p2257_p2 = pnand %p2256_p1, %p2250_p7 }
  0x5f   : > { %2260 = shalt.err (!%p2257_p2)
}
  0x60   : > { %s2261_s26 = scalar_lea.vmem %s2546_s6, 1024  ;;  %s2359_s29 = smov [#allocation6]  }
  0x61   : > { %p2262_p10 = scmp.ne.s32.totalorder %s2546_s6, %s2261_s26  ;;  %s2266_s5 = sshll.u32 %s2359_s29, 4  ;;  %s2267_s5 = int_to_ptr.vmem [resolvable:$false] %s2266_s5 }
  0x62   : > { %s2268_s10 = scalar_lea.vmem %s2267_s5, 2048  ;;  %p2269_p4 = scmp.lt.s32.totalorder %s2546_s6, %s2267_s5 }
  0x63   : > { %p2264_p5 = pnand %p2262_p10, %p2248_p3  ;;  %p2270_p13 = scmp.lt.s32.totalorder %s2268_s10, %s2261_s26 }
  0x65   : > { %p2265_p6 = pneg %p2264_p5  ;;  %p2271_p9 = por %p2270_p13, %p2269_p4 }
  0x67   : > { %p2272_p12 = pnand %p2271_p9, %p2265_p6 }
  0x69   : > { %2275 = shalt.err (!%p2272_p12)
}
  0x6a   : > { %2019 = dma.hbm_to_vmem [thread:$0]  (!%p2542_p11), %s2540_s30, 1024, %s2546_s6, %s2548_s7, %s2354_s12, %s2354_s12, %s2355_s13  }
  0x6b   : > { %213 = sbr.rel (%p2428_p8) target bundleno = 949 (0x3b5), region = 36  ;;  %p2970_p3 = scmp.eq.s32.totalorder (!%p2428_p8), %s2409_s19, 0 }
  0x72   : > { %2321 = dma.done.wait (%p2970_p3), [#allocation5], 16   ;;  %p2971_p7 = pmov %p2970_p3 }
  0x73   : > { %s2586_s9 = sand.u32 1, %s2342_s16   ;;  %p2972_p4 = scmp.ne.s32.totalorder %s2962_s21, 0 }
  0x74   : > { %2323 = vsyncadd (%p2971_p7), [#allocation5], 4294967280  ;;  %s1605_s8 = sshll.u32 %s2586_s9, 6  ;;  %s220_s11 = scalar_lea.sflag [#allocation3], %s2586_s9 }
  0x75   : > { %s2592_s12 = scalar_lea.vmem [#allocation6], %s1605_s8 }
  0x76   : > { %2325 = dma.done.wait (%p2972_p4), %s220_s11, 1024  }
  0x77   : > { %2327 = vsyncadd (%p2972_p4), %s220_s11, 4294966272  ;;  %p2973_p8 = pmov %p2970_p3 }
  0x78   : > { %p2974_p6 = pmov %p2970_p3 }
  0x79   : > { %2329 = dma.done.wait (%p2973_p8), [#allocation8], 7424  }
  0x7a   : > { %2331 = vsyncadd (%p2974_p6), [#allocation8], 4294959872 }
  0x7b   : > { %236 = sfence }
  0x7c   : > { %v2073_v0 = vld [vmem:[#allocation9] sm:$0xff]   ;;  %v2074_v1 = vld [vmem:[#allocation9 + $0x8] sm:$0xff]   ;;  %v2075_v2 = vld [vmem:[#allocation9 + $0x10] sm:$0xff]   ;;  %s393_s21 = sld [smem:[#allocation2]]  ;;  %s1609_s23 = sld [smem:[#allocation2 + $0x1]] }
  0x7d   : > { %1766 = vmatprep.subr.bf16.mxu1 %v2073_v0  ;;  %v2076_v3 = vld [vmem:[#allocation9 + $0x18] sm:$0xff]   ;;  %v260_v4 = vld [vmem:[%s2592_s12] sm:$0xff]  ;;  %v2077_v7 = vld [vmem:[#allocation9 + $0x20] sm:$0xff]   ;;  %s256_s13 = scalar_lea.vmem [#allocation10], %s1605_s8  ;;  %s1681_s30 = sshll.u32 %s2409_s19, 10 }
  0x7e   : > { %1767 = vmatpush3.bf16.msra.mxu1 %v2073_v0  ;;  %v261_v5 = vld [vmem:[%s2592_s12 + $0x8] sm:$0xff]  ;;  %v2078_v8 = vld [vmem:[#allocation9 + $0x28] sm:$0xff]   ;;  %v2079_v9 = vld [vmem:[#allocation9 + $0x30] sm:$0xff]   ;;  %s1490_s6 = sshll.u32 %s256_s13, 4  ;;  %s2908_s28 = scalar_lea.hbm %s2958_s4, %s1681_s30  ;;  %s2910_s6 = int_to_ptr.vmem [resolvable:$true] %s1490_s6 }
  0x7f   : > { %1768 = vmatprep.subr.bf16.mxu1 %v2074_v1  ;;  %v2604_v6 = vpack.c.bf16 %v261_v5, %v260_v4  ;;  %v2080_v10 = vld [vmem:[#allocation9 + $0x38] sm:$0xff]   ;;  %v262_v11 = vld [vmem:[%s2592_s12 + $0x10] sm:$0xff]  ;;  %v263_v12 = vld [vmem:[%s2592_s12 + $0x18] sm:$0xff]  ;;  %s1477_s19 = scalar_lea.sflag [#allocation4], %s2586_s9  ;;  %s2276_s27 = scalar_lea.vmem %s2910_s6, 1024 }
  0x80   : > { %v264_v13 = vld [vmem:[%s2592_s12 + $0x20] sm:$0xff]  ;;  %v265_v14 = vld [vmem:[%s2592_s12 + $0x28] sm:$0xff]  ;;  %v2081_v15 = vld [vmem:[#allocation9 + $0x40] sm:$0xff]   ;;  %v2611_v16 = vpack.c.bf16 %v263_v12, %v262_v11  ;;  %p2277_p11 = scmp.ne.s32.totalorder %s2910_s6, %s2276_s27  ;;  %p2975_p0 = scmp.ne.s32.totalorder %s2968_s20, 0 }
  0x81   : > { %1782 = vmatprep.mubr.bf16.mxu1 %v2604_v6  ;;  %v2082_v17 = vld [vmem:[#allocation9 + $0x48] sm:$0xff]   ;;  %v2613_v18 = vpack.c.bf16 %v265_v14, %v264_v13  ;;  %v266_v19 = vld [vmem:[%s2592_s12 + $0x30] sm:$0xff]  ;;  %v2083_v21 = vld [vmem:[#allocation9 + $0x50] sm:$0xff]   ;;  %s2360_s26 = smov [#allocation10]  }
  0x82   : > { %1769 = vmatpush3.bf16.msra.mxu1 %v2074_v1  ;;  %v267_v20 = vld [vmem:[%s2592_s12 + $0x38] sm:$0xff]  ;;  %v2084_v23 = vld [vmem:[#allocation9 + $0x58] sm:$0xff]   ;;  %v2085_v24 = vld [vmem:[#allocation9 + $0x60] sm:$0xff]   ;;  %p2278_p1 = pnand %p2277_p11, %p2975_p0  ;;  %s2280_s29 = sshll.u32 %s2360_s26, 4  ;;  %s2281_s29 = int_to_ptr.vmem [resolvable:$false] %s2280_s29 }
  0x83   : > { %1770 = vmatprep.subr.bf16.mxu1 %v2075_v2  ;;  %v2619_v22 = vpack.c.bf16 %v267_v20, %v266_v19  ;;  %v2086_v25 = vld [vmem:[#allocation9 + $0x68] sm:$0xff]   ;;  %v2087_v26 = vld [vmem:[#allocation9 + $0x70] sm:$0xff]   ;;  %v2088_v27 = vld [vmem:[#allocation9 + $0x78] sm:$0xff]   ;;  %s2282_s5 = scalar_lea.vmem %s2281_s29, 2048  ;;  %p2283_p10 = scmp.lt.s32.totalorder %s2910_s6, %s2281_s29 }
  0x84   : > { %v2089_v28 = vld [vmem:[#allocation9 + $0x80] sm:$0xff]   ;;  %v2093_v30 = vld [vmem:[#allocation9 + $0xc8] sm:$0xff]   ;;  %v2095_v31 = vld [vmem:[#allocation9 + $0xd0] sm:$0xff]   ;;  %p2279_p2 = pneg %p2278_p1  ;;  %p2284_p5 = scmp.lt.s32.totalorder %s2282_s5, %s2276_s27 }
  0x85   : > { %v2091_v29 = vld [vmem:[#allocation9 + $0xc0] sm:$0xff]   ;;  %v2097_v32 = vld [vmem:[#allocation9 + $0xd8] sm:$0xff]   ;;  %v1610_v33 = vld [vmem:[#allocation7] ss:$0 sm:$0xff] }
  0x86   : > { %1771 = vmatpush3.bf16.msra.mxu1 %v2075_v2  ;;  %1838 = vmatprep.subr.bf16.mxu0 %v2091_v29  ;;  %v2090_v51 = vld [vmem:[#allocation9 + $0x88] sm:$0xff]   ;;  %v2092_v60 = vld [vmem:[#allocation9 + $0x90] sm:$0xff]   ;;  %v2094_v0 = vld [vmem:[#allocation9 + $0x98] sm:$0xff]   ;;  %p2285_p13 = por %p2284_p5, %p2283_p10 }
  0x87   : > { %1772 = vmatprep.subr.bf16.mxu1 %v2076_v3  ;;  %1839 = vmatpush3.bf16.msra.mxu0 %v2091_v29  ;;  %v2096_v1 = vld [vmem:[#allocation9 + $0xa0] sm:$0xff]   ;;  %v2098_v2 = vld [vmem:[#allocation9 + $0xa8] sm:$0xff]   ;;  %v2100_v4 = vld [vmem:[#allocation9 + $0xb0] sm:$0xff]  }
  0x88   : > { %1840 = vmatprep.subr.bf16.mxu0 %v2093_v30  ;;  %v2101_v5 = vld [vmem:[#allocation9 + $0xe8] sm:$0xff]   ;;  %v2634_v11 = vld [vmem:[#allocation9 + $0x100] sm:$0xff]   ;;  %v2637_v12 = vld [vmem:[#allocation9 + $0x190] sm:$0xff]   ;;  %p2286_p9 = pnand %p2285_p13, %p2279_p2 }
  0x89   : > { %v2641_v13 = vld [vmem:[#allocation9 + $0x198] sm:$0xff]   ;;  %v2645_v14 = vld [vmem:[#allocation9 + $0x1a0] sm:$0xff]  }
  0x8a   : > { %1773 = vmatpush3.bf16.msra.mxu1 %v2076_v3  ;;  %v2099_v3 = vld [vmem:[#allocation9 + $0xe0] sm:$0xff]   ;;  %v2663_v19 = vld [vmem:[#allocation7 + $0x8] ss:$0 sm:$0xff] }
  0x8b   : > { %1774 = vmatprep.subr.bf16.mxu1 %v2077_v7  ;;  %1841 = vmatpush3.bf16.msra.mxu0 %v2093_v30 }
  0x8c   : > { %1842 = vmatprep.subr.bf16.mxu0 %v2095_v31 }
  0x8e   : > { %1775 = vmatpush3.bf16.msra.mxu1 %v2077_v7  ;;  %v2102_v7 = vld [vmem:[#allocation9 + $0xb8] sm:$0xff]  }
  0x8f   : > { %1776 = vmatprep.subr.bf16.mxu1 %v2078_v8  ;;  %1843 = vmatpush3.bf16.msra.mxu0 %v2095_v31 }
  0x90   : > { %1844 = vmatprep.subr.bf16.mxu0 %v2097_v32 }
  0x92   : > { %1777 = vmatpush3.bf16.msra.mxu1 %v2078_v8  ;;  %v2103_v8 = vld [vmem:[#allocation9 + $0xf0] sm:$0xff]  }
  0x93   : > { %1778 = vmatprep.subr.bf16.mxu1 %v2079_v9  ;;  %1845 = vmatpush3.bf16.msra.mxu0 %v2097_v32 }
  0x94   : > { %1846 = vmatprep.subr.bf16.mxu0 %v2099_v3 }
  0x96   : > { %1779 = vmatpush3.bf16.msra.mxu1 %v2079_v9  ;;  %v2105_v9 = vld [vmem:[#allocation9 + $0xf8] sm:$0xff]  }
  0x97   : > { %1780 = vmatprep.subr.bf16.mxu1 %v2080_v10  ;;  %1847 = vmatpush3.bf16.msra.mxu0 %v2099_v3 }
  0x98   : > { %1848 = vmatprep.subr.bf16.mxu0 %v2101_v5 }
  0x9a   : > { %1781 = vmatpush3.bf16.msra.mxu1 %v2080_v10  ;;  %v2629_v10 = vld [vmem:[#allocation9 + $0x188] sm:$0xff]  }
  0x9b   : > { %1790 = vmatprep.subr.bf16.mxu1 %v2081_v15  ;;  %1849 = vmatpush3.bf16.msra.mxu0 %v2101_v5 }
  0x9c   : > { %1850 = vmatprep.subr.bf16.mxu0 %v2103_v8 }
  0x9d   : > { %1783 = vmatmul.mubr.bf16.vlgmr.msra.gmra.mrb[0].mxu1 %v2611_v16 }
  0x9e   : > { %1786 = vmatprep.mubr.bf16.mxu1 %v2613_v18  ;;  %1791 = vmatpush3.bf16.msra.mxu1 %v2081_v15  ;;  %v2649_v15 = vld [vmem:[#allocation9 + $0x1a8] sm:$0xff]  }
  0x9f   : > { %1792 = vmatprep.subr.bf16.mxu1 %v2082_v17  ;;  %1851 = vmatpush3.bf16.msra.mxu0 %v2103_v8 }
  0xa0   : > { %1852 = vmatprep.subr.bf16.mxu0 %v2105_v9 }
  0xa2   : > { %1793 = vmatpush3.bf16.msra.mxu1 %v2082_v17  ;;  %v2656_v17 = vld [vmem:[#allocation9 + $0x1b8] sm:$0xff]  }
  0xa3   : > { %1794 = vmatprep.subr.bf16.mxu1 %v2083_v21  ;;  %1853 = vmatpush3.bf16.msra.mxu0 %v2105_v9 }
  0xa4   : > { %1862 = vmatprep.subr.bf16.mxu0 %v2634_v11 }
  0xa5   : > { %1787 = vmatmul.mubr.bf16.gmra.mrb[4].mxu1 %v2619_v22 }
  0xa6   : > { %1795 = vmatpush3.bf16.msra.mxu1 %v2083_v21  ;;  %v2665_v21 = vstv %s393_s21 }
  0xa7   : > { %1796 = vmatprep.subr.bf16.mxu1 %v2084_v23 }
  0xaa   : > { %1797 = vmatpush3.bf16.msra.mxu1 %v2084_v23 }
  0xab   : > { %1798 = vmatprep.subr.bf16.mxu1 %v2085_v24 }
  0xae   : > { %1799 = vmatpush3.bf16.msra.mxu1 %v2085_v24 }
  0xaf   : > { %1800 = vmatprep.subr.bf16.mxu1 %v2086_v25 }
  0xb2   : > { %1801 = vmatpush3.bf16.msra.mxu1 %v2086_v25  ;;  %v2672_v25 = vld [vmem:[#allocation7 + $0x4] ss:$0 sm:$0xff] }
  0xb3   : > { %1802 = vmatprep.subr.bf16.mxu1 %v2087_v26 }
  0xb6   : > { %1803 = vmatpush3.bf16.msra.mxu1 %v2087_v26  ;;  %v2674_v26 = vstv %s1609_s23 }
  0xb7   : > { %1804 = vmatprep.subr.bf16.mxu1 %v2088_v27 }
  0xba   : > { %1805 = vmatpush3.bf16.msra.mxu1 %v2088_v27 }
  0xbb   : > { %1814 = vmatprep.subr.bf16.mxu1 %v2089_v28 }
 0x170   : > { %v1784_v34 = vpop.f32.mrb[0].mxu1 }
 0x171   : > { %v490_v35 = vadd.f32 %v1784_v34, %v1610_v33  ;;  %v481_v36 = vpop.f32.mrb[1].mxu1 }
 0x172   : > { %v482_v37 = vadd.f32 %v1610_v33, %v481_v36  ;;  %v1785_v38 = vpop.f32.mrb[2].mxu1 }
 0x173   : > { %v493_v39 = vadd.f32 %v1785_v38, %v1610_v33  ;;  %v484_v40 = vpop.f32.mrb[3].mxu1  ;;  %v514_v42 = vmax.f32 %v490_v35, 0.0 }
 0x174   : > { %v485_v41 = vadd.f32 %v1610_v33, %v484_v40  ;;  %v512_v44 = vmax.f32 %v482_v37, 0.0 }
 0x175   : > { %v515_v43 = vmax.f32 %v493_v39, 0.0 }
 0x176   : > { %v513_v45 = vmax.f32 %v485_v41, 0.0 }
 0x177   : > { %v521_v46 = vpack.c.bf16 %v515_v43, %v514_v42  ;;  %v2702_v42 = vld [vmem:[#allocation7 + $0x5] ss:$0 sm:$0xff] }
 0x178   : > { %v520_v47 = vpack.c.bf16 %v513_v45, %v512_v44  ;;  %v1788_v48 = vpop.f32.mrb[4].mxu1 }
 0x179   : > { %v506_v49 = vadd.f32 %v1788_v48, %v1610_v33  ;;  %v497_v50 = vpop.f32.mrb[5].mxu1 }
 0x17a   : > { %v498_v52 = vadd.f32 %v1610_v33, %v497_v50  ;;  %1806 = vmatprep.mubr.bf16.mxu1 %v520_v47  ;;  %v1789_v53 = vpop.f32.mrb[6].mxu1 }
 0x17b   : > { %v518_v54 = vmax.f32 %v506_v49, 0.0  ;;  %v509_v55 = vadd.f32 %v1789_v53, %v1610_v33  ;;  %1807 = vmatmul.mubr.bf16.vlgmr.msra.gmra.mrb[8].mxu1 %v521_v46  ;;  %v500_v56 = vpop.f32.mrb[7].mxu1 }
 0x17c   : > { %v516_v57 = vmax.f32 %v498_v52, 0.0  ;;  %v501_v58 = vadd.f32 %v1610_v33, %v500_v56  ;;  %1815 = vmatpush3.bf16.msra.mxu1 %v2089_v28 }
 0x17d   : > { %v519_v59 = vmax.f32 %v509_v55, 0.0  ;;  %1816 = vmatprep.subr.bf16.mxu1 %v2090_v51 }
 0x17e   : > { %v517_v61 = vmax.f32 %v501_v58, 0.0 }
 0x17f   : > { %v523_v62 = vpack.c.bf16 %v519_v59, %v518_v54 }
 0x180   : > { %v522_v63 = vpack.c.bf16 %v517_v61, %v516_v57  ;;  %1817 = vmatpush3.bf16.msra.mxu1 %v2090_v51 }
 0x181   : > { %1818 = vmatprep.subr.bf16.mxu1 %v2092_v60 }
 0x182   : > { %1810 = vmatprep.mubr.bf16.mxu1 %v522_v63 }
 0x183   : > { %1811 = vmatmul.mubr.bf16.gmra.mrb[12].mxu1 %v523_v62 }
 0x184   : > { %1819 = vmatpush3.bf16.msra.mxu1 %v2092_v60  ;;  %1830 = vmatprep.mubr.bf16.mxu1 %v2604_v6  ;;  %v2623_v6 = vld [vmem:[#allocation9 + $0x180] sm:$0xff]  }
 0x185   : > { %1820 = vmatprep.subr.bf16.mxu1 %v2094_v0 }
 0x188   : > { %1821 = vmatpush3.bf16.msra.mxu1 %v2094_v0 }
 0x189   : > { %1822 = vmatprep.subr.bf16.mxu1 %v2096_v1 }
 0x18c   : > { %1823 = vmatpush3.bf16.msra.mxu1 %v2096_v1 }
 0x18d   : > { %1824 = vmatprep.subr.bf16.mxu1 %v2098_v2 }
 0x190   : > { %1825 = vmatpush3.bf16.msra.mxu1 %v2098_v2 }
 0x191   : > { %1826 = vmatprep.subr.bf16.mxu1 %v2100_v4 }
 0x194   : > { %1827 = vmatpush3.bf16.msra.mxu1 %v2100_v4 }
 0x195   : > { %1828 = vmatprep.subr.bf16.mxu1 %v2102_v7 }
 0x198   : > { %1829 = vmatpush3.bf16.msra.mxu1 %v2102_v7 }
 0x199   : > { %1934 = vmatprep.subr.bf16.mxu1 %v2623_v6 }
 0x19b   : > { %1831 = vmatmul.mubr.bf16.vlgmr.msra.gmra.mrb[16].mxu1 %v2611_v16  ;;  %v2651_v16 = vld [vmem:[#allocation9 + $0x1b0] sm:$0xff]  }
 0x19c   : > { %1942 = vmatpush3.bf16.msra.mxu1 %v2623_v6  ;;  %1834 = vmatprep.mubr.bf16.mxu1 %v2613_v18  ;;  %v2661_v18 = vld [vmem:[#allocation7 + $0x1] ss:$0 sm:$0xff] }
 0x19d   : > { %1935 = vmatprep.subr.bf16.mxu1 %v2629_v10 }
 0x1a0   : > { %1943 = vmatpush3.bf16.msra.mxu1 %v2629_v10 }
 0x1a1   : > { %1936 = vmatprep.subr.bf16.mxu1 %v2637_v12 }
 0x1a3   : > { %1835 = vmatmul.mubr.bf16.gmra.mrb[20].mxu1 %v2619_v22  ;;  %v2667_v22 = vld [vmem:[#allocation7 + $0x3] ss:$0 sm:$0xff] }
 0x1a4   : > { %1944 = vmatpush3.bf16.msra.mxu1 %v2637_v12 }
 0x1a5   : > { %1937 = vmatprep.subr.bf16.mxu1 %v2641_v13 }
 0x1a8   : > { %1945 = vmatpush3.bf16.msra.mxu1 %v2641_v13 }
 0x1a9   : > { %1938 = vmatprep.subr.bf16.mxu1 %v2645_v14 }
 0x1ac   : > { %1946 = vmatpush3.bf16.msra.mxu1 %v2645_v14 }
 0x1ad   : > { %1939 = vmatprep.subr.bf16.mxu1 %v2649_v15 }
 0x1b0   : > { %1947 = vmatpush3.bf16.msra.mxu1 %v2649_v15 }
 0x1b1   : > { %1940 = vmatprep.subr.bf16.mxu1 %v2651_v16 }
 0x1b4   : > { %1948 = vmatpush3.bf16.msra.mxu1 %v2651_v16 }
 0x1b5   : > { %1941 = vmatprep.subr.bf16.mxu1 %v2656_v17 }
 0x1b8   : > { %1949 = vmatpush3.bf16.msra.mxu1 %v2656_v17 }
 0x24e   : > { %v1808_v20 = vpop.f32.mrb[8].mxu1 }
 0x24f   : > { %v2670_v23 = vadd.f32 %v1808_v20, %v2661_v18  ;;  %v610_v24 = vpop.f32.mrb[9].mxu1 }
 0x250   : > { %v2677_v27 = vadd.f32 %v2661_v18, %v610_v24  ;;  %v1809_v28 = vpop.f32.mrb[10].mxu1 }
 0x251   : > { %v680_v29 = vmul.f32 %v2665_v21, %v2670_v23  ;;  %v764_v30 = vsub.f32 %v2670_v23, %v2663_v19  ;;  %v2684_v31 = vadd.f32 %v1809_v28, %v2661_v18  ;;  %v613_v32 = vpop.f32.mrb[11].mxu1  ;;  %v647_v33 = vsub.f32 %v2667_v22, %v2670_v23 }
 0x252   : > { %v678_v34 = vmul.f32 %v2665_v21, %v2677_v27  ;;  %v762_v35 = vsub.f32 %v2677_v27, %v2663_v19  ;;  %v2693_v36 = vadd.f32 %v2661_v18, %v613_v32  ;;  %v645_v37 = vsub.f32 %v2667_v22, %v2677_v27 }
 0x253   : > { %v692_v38 = vadd.f32 %v2672_v25, %v680_v29  ;;  %v772_v39 = vand.u32 2147483647, %v764_v30  ;;  %v681_v40 = vmul.f32 %v2665_v21, %v2684_v31  ;;  %v765_v41 = vsub.f32 %v2684_v31, %v2663_v19 }
 0x254   : > { %v2704_v43 = vand.u32 2147483647, %v762_v35  ;;  %v2708_v44 = vmul.f32 %v2665_v21, %v2693_v36  ;;  %v763_v45 = vsub.f32 %v2693_v36, %v2663_v19  ;;  %v646_v46 = vsub.f32 %v2667_v22, %v2693_v36 }
 0x255   : > { %v700_v47 = vmul.f32 %v692_v38, %v2670_v23  ;;  %v780_v48 = vmul.f32 2.0, %v772_v39  ;;  %v693_v49 = vadd.f32 %v2672_v25, %v681_v40  ;;  %v773_v50 = vand.u32 2147483647, %v765_v41 }
 0x256   : > { %v2716_v51 = vand.u32 2147483647, %v763_v45  ;;  %v1812_v52 = vpop.f32.mrb[12].mxu1  ;;  %v653_v53 = vand.u32 2147483647, %v645_v37  ;;  %v648_v54 = vsub.f32 %v2667_v22, %v2684_v31  ;;  %v2721_v55 = vadd.f32 %v2672_v25, %v678_v34 }
 0x257   : > { %v712_v56 = vadd.f32 %v2702_v42, %v700_v47  ;;  %v788_v57 = vadd.f32 1.0, %v780_v48  ;;  %v805_v58 = vsub.f32 %v2674_v26, %v780_v48  ;;  %v701_v59 = vmul.f32 %v693_v49, %v2684_v31  ;;  %v626_v60 = vpop.f32.mrb[13].mxu1 }
 0x258   : > { %v781_v61 = vmul.f32 2.0, %v773_v50  ;;  %v2727_v62 = vadd.f32 %v1812_v52, %v2661_v18  ;;  %v2730_v63 = vadd.f32 %v2661_v18, %v626_v60  ;;  %v1813_v0 = vpop.f32.mrb[14].mxu1  ;;  %v654_v1 = vand.u32 2147483647, %v646_v46 }
 0x259   : > { %v722_v2 = vmul.f32 1.442695, %v712_v56  ;;  %2129 = vrcp.f32 %v788_v57  ;;  %v813_v3 = vand.u32 2147483647, %v805_v58  ;;  %v713_v4 = vadd.f32 %v2702_v42, %v701_v59  ;;  %v629_v5 = vpop.f32.mrb[15].mxu1 }
 0x25a   : > { %v789_v7 = vadd.f32 1.0, %v781_v61  ;;  %v806_v8 = vsub.f32 %v2674_v26, %v781_v61  ;;  %v2736_v9 = vmul.f32 %v2665_v21, %v2727_v62  ;;  %v768_v20 = vsub.f32 %v2727_v62, %v2663_v19 }
 0x25b   : > { %2131 = vpow2.f32 %v722_v2  ;;  %v821_v24 = vadd.f32 1.0, %v813_v3  ;;  %v724_v28 = vmul.f32 1.442695, %v713_v4  ;;  %v2742_v29 = vmul.f32 %v2665_v21, %v2730_v63 }
 0x25c   : > { %2133 = vrcp.f32 %v789_v7  ;;  %v814_v30 = vand.u32 2147483647, %v806_v8  ;;  %v776_v32 = vand.u32 2147483647, %v768_v20  ;;  %v766_v34 = vsub.f32 %v2730_v63, %v2663_v19 }
 0x25d   : > { %2135 = vrcp.f32 %v821_v24  ;;  %v2747_v35 = vadd.f32 %v1813_v0, %v2661_v18  ;;  %v2750_v37 = vadd.f32 %v2661_v18, %v629_v5  ;;  %v661_v38 = vsub.f32 %v2677_v27, %v653_v53 }
 0x25e   : > { %2137 = vpow2.f32 %v724_v28  ;;  %v822_v39 = vadd.f32 1.0, %v814_v30  ;;  %v784_v40 = vmul.f32 2.0, %v776_v32  ;;  %v774_v41 = vand.u32 2147483647, %v766_v34 }
 0x25f   : > { %v2755_v45 = vmul.f32 %v2665_v21, %v2747_v35  ;;  %v769_v46 = vsub.f32 %v2747_v35, %v2663_v19  ;;  %v2761_v47 = vmul.f32 %v2665_v21, %v2750_v37  ;;  %v767_v18 = vsub.f32 %v2750_v37, %v2663_v19 }
 0x260   : > { %2139 = vrcp.f32 %v822_v39  ;;  %v792_v48 = vadd.f32 1.0, %v784_v40  ;;  %v809_v49 = vsub.f32 %v2674_v26, %v784_v40  ;;  %v662_v50 = vsub.f32 %v2693_v36, %v654_v1 }
 0x261   : > { %v777_v52 = vand.u32 2147483647, %v769_v46  ;;  %v775_v53 = vand.u32 2147483647, %v767_v18  ;;  %v669_v56 = vmax.f32 %v661_v38, 0.0  ;;  %v649_v57 = vsub.f32 %v2667_v22, %v2730_v63 }
 0x262   : > { %2141 = vrcp.f32 %v792_v48  ;;  %v817_v58 = vand.u32 2147483647, %v809_v49  ;;  %v670_v59 = vmax.f32 %v662_v50, 0.0  ;;  %v655_v21 = vand.u32 2147483647, %v647_v33 }
 0x263   : > { %v2772_v19 = vpop.eup %2129  ;;  %v785_v60 = vmul.f32 2.0, %v777_v52  ;;  %v656_v61 = vand.u32 2147483647, %v648_v54  ;;  %v650_v0 = vsub.f32 %v2667_v22, %v2750_v37  ;;  %v657_v1 = vand.u32 2147483647, %v649_v57  ;;  %v2109_v57 = vld [vmem:[#allocation9 + $0x108] sm:$0xff]  }
 0x264   : > { %v825_v2 = vadd.f32 1.0, %v817_v58  ;;  %v960_v3 = vpack.c.bf16 %v670_v59, %v669_v56  ;;  %v663_v4 = vsub.f32 %v2670_v23, %v655_v21  ;;  %v651_v5 = vsub.f32 %v2667_v22, %v2727_v62 }
 0x265   : > { %v2779_v7 = vpop.eup %2131  ;;  %v793_v8 = vadd.f32 1.0, %v785_v60  ;;  %v810_v33 = vsub.f32 %v2674_v26, %v785_v60  ;;  %v664_v20 = vsub.f32 %v2684_v31, %v656_v61  ;;  %v658_v24 = vand.u32 2147483647, %v650_v0 }
 0x266   : > { %v2783_v54 = vpop.eup %2133  ;;  %2143 = vrcp.f32 %v825_v2  ;;  %1854 = vmatprep.mubr.bf16.mxu0 %v960_v3  ;;  %v671_v28 = vmax.f32 %v663_v4, 0.0  ;;  %v665_v30 = vsub.f32 %v2730_v63, %v657_v1  ;;  %v652_v32 = vsub.f32 %v2667_v22, %v2747_v35 }
 0x267   : > { %v2788_v34 = vpop.eup %2135  ;;  %2145 = vrcp.f32 %v793_v8  ;;  %v818_v38 = vand.u32 2147483647, %v810_v33  ;;  %v672_v39 = vmax.f32 %v664_v20, 0.0  ;;  %v666_v40 = vsub.f32 %v2750_v37, %v658_v24  ;;  %v2111_v33 = vld [vmem:[#allocation9 + $0x110] sm:$0xff]  }
 0x268   : > { %v2791_v46 = vpop.eup %2137  ;;  %v673_v18 = vmax.f32 %v665_v30, 0.0  ;;  %v659_v48 = vand.u32 2147483647, %v651_v5  ;;  %v660_v49 = vand.u32 2147483647, %v652_v32  ;;  %v691_v50 = vadd.f32 %v2672_v25, %v2708_v44 }
 0x269   : > { %v826_v52 = vadd.f32 1.0, %v818_v38  ;;  %v961_v56 = vpack.c.bf16 %v672_v39, %v671_v28  ;;  %v674_v58 = vmax.f32 %v666_v40, 0.0  ;;  %v698_v22 = vmul.f32 %v2721_v55, %v2677_v27 }
 0x26a   : > { %v2797_v59 = vpop.eup %2139  ;;  %v667_v21 = vsub.f32 %v2727_v62, %v659_v48  ;;  %v668_v60 = vsub.f32 %v2747_v35, %v660_v49  ;;  %v699_v61 = vmul.f32 %v691_v50, %v2693_v36  ;;  %v782_v0 = vmul.f32 2.0, %v774_v41  ;;  %v1631_v50 = vld [vmem:[#allocation7 + $0x6] ss:$0 sm:$0xff] }
 0x26b   : > { %2147 = vrcp.f32 %v826_v52  ;;  %1855 = vmatmul.mubr.bf16.vlgmr.msra.gmra.mrb[0].mxu0 %v961_v56  ;;  %v962_v1 = vpack.c.bf16 %v674_v58, %v673_v18  ;;  %v710_v44 = vadd.f32 %v2702_v42, %v698_v22  ;;  %v783_v2 = vmul.f32 2.0, %v775_v53  ;;  %v2113_v56 = vld [vmem:[#allocation9 + $0x118] sm:$0xff]  }
 0x26c   : > { %v2803_v3 = vpop.eup %2141  ;;  %1863 = vmatpush3.bf16.msra.mxu0 %v2634_v11  ;;  %v675_v55 = vmax.f32 %v667_v21, 0.0  ;;  %v676_v4 = vmax.f32 %v668_v60, 0.0  ;;  %v711_v5 = vadd.f32 %v2702_v42, %v699_v61  ;;  %v790_v8 = vadd.f32 1.0, %v782_v0  ;;  %v1632_v60 = vld [vmem:[#allocation7 + $0x7] ss:$0 sm:$0xff] }
 0x26d   : > { %1864 = vmatprep.subr.bf16.mxu0 %v2109_v57  ;;  %1858 = vmatprep.mubr.bf16.mxu0 %v962_v1  ;;  %v718_v20 = vmul.f32 1.442695, %v710_v44  ;;  %v791_v41 = vadd.f32 1.0, %v783_v2  ;;  %v807_v24 = vsub.f32 %v2674_v26, %v782_v0  ;;  %v808_v28 = vsub.f32 %v2674_v26, %v783_v2 }
 0x26e   : > { %v963_v30 = vpack.c.bf16 %v676_v4, %v675_v55  ;;  %v720_v53 = vmul.f32 1.442695, %v711_v5  ;;  %2149 = vrcp.f32 %v790_v8  ;;  %v1086_v11 = vpack.c.bf16 %v2791_v46, %v2779_v7  ;;  %v2125_v7 = vld [vmem:[#allocation9 + $0x160] sm:$0xff]   ;;  %v2126_v46 = vld [vmem:[#allocation9 + $0x168] sm:$0xff]  }
 0x26f   : > { %2151 = vpow2.f32 %v718_v20  ;;  %v815_v32 = vand.u32 2147483647, %v807_v24  ;;  %v816_v38 = vand.u32 2147483647, %v808_v28  ;;  %v694_v39 = vadd.f32 %v2672_v25, %v2742_v29 }
 0x270   : > { %v2144_v40 = vpop.eup %2143  ;;  %1865 = vmatpush3.bf16.msra.mxu0 %v2109_v57  ;;  %2153 = vpow2.f32 %v720_v53  ;;  %v695_v18 = vadd.f32 %v2672_v25, %v2761_v47  ;;  %v696_v48 = vadd.f32 %v2672_v25, %v2736_v9  ;;  %v697_v49 = vadd.f32 %v2672_v25, %v2755_v45 }
 0x271   : > { %v2146_v52 = vpop.eup %2145  ;;  %1866 = vmatprep.subr.bf16.mxu0 %v2111_v33  ;;  %2155 = vrcp.f32 %v791_v41  ;;  %v823_v58 = vadd.f32 1.0, %v815_v32  ;;  %v824_v22 = vadd.f32 1.0, %v816_v38  ;;  %v841_v29 = vsub.f32 %v2803_v3, %v2144_v40  ;;  %v2115_v3 = vld [vmem:[#allocation9 + $0x120] sm:$0xff]   ;;  %v2117_v38 = vld [vmem:[#allocation9 + $0x128] sm:$0xff]  }
 0x272   : > { %v702_v57 = vmul.f32 %v694_v39, %v2730_v63  ;;  %v703_v21 = vmul.f32 %v695_v18, %v2750_v37  ;;  %v704_v47 = vmul.f32 %v696_v48, %v2727_v62  ;;  %v705_v9 = vmul.f32 %v697_v49, %v2747_v35 }
 0x273   : > { %1859 = vmatmul.mubr.bf16.gmra.mrb[4].mxu0 %v963_v30  ;;  %2157 = vrcp.f32 %v823_v58  ;;  %v738_v25 = vmul.f32 %v1631_v50, %v2677_v27  ;;  %v739_v45 = vmul.f32 %v1631_v50, %v2693_v36  ;;  %v740_v61 = vmul.f32 %v1631_v50, %v2670_v23 }
 0x274   : > { %1867 = vmatpush3.bf16.msra.mxu0 %v2111_v33  ;;  %2159 = vrcp.f32 %v824_v22  ;;  %v714_v0 = vadd.f32 %v2702_v42, %v702_v57  ;;  %v715_v1 = vadd.f32 %v2702_v42, %v703_v21  ;;  %v716_v44 = vadd.f32 %v2702_v42, %v704_v47  ;;  %v2119_v57 = vld [vmem:[#allocation9 + $0x130] sm:$0xff]  }
 0x275   : > { %v2148_v2 = vpop.eup %2147  ;;  %1868 = vmatprep.subr.bf16.mxu0 %v2113_v56  ;;  %v717_v55 = vadd.f32 %v2702_v42, %v705_v9  ;;  %v2831_v4 = vadd.f32 %v1632_v60, %v738_v25  ;;  %v2833_v27 = vadd.f32 %v1632_v60, %v739_v45  ;;  %v741_v36 = vmul.f32 %v1631_v50, %v2684_v31 }
 0x276   : > { %v842_v23 = vsub.f32 %v2146_v52, %v2148_v2  ;;  %v726_v5 = vmul.f32 1.442695, %v714_v0  ;;  %v728_v8 = vmul.f32 1.442695, %v715_v1  ;;  %v730_v33 = vmul.f32 1.442695, %v716_v44 }
 0x277   : > { %v732_v20 = vmul.f32 1.442695, %v717_v55  ;;  %v1210_v41 = vpack.c.bf16 %v2833_v27, %v2831_v4  ;;  %v2838_v24 = vadd.f32 %v1632_v60, %v740_v61  ;;  %v2840_v28 = vadd.f32 %v1632_v60, %v741_v36  ;;  %v1832_v4 = vpop.f32.mrb[16].mxu1 }
 0x278   : > { %v2150_v30 = vpop.eup %2149  ;;  %1869 = vmatpush3.bf16.msra.mxu0 %v2113_v56  ;;  %v1338_v42 = vpack.c.bf16 %v842_v23, %v841_v29  ;;  %2161 = vpow2.f32 %v726_v5  ;;  %v742_v53 = vmul.f32 %v1631_v50, %v2730_v63  ;;  %v743_v31 = vmul.f32 %v1631_v50, %v2750_v37  ;;  %v2121_v23 = vld [vmem:[#allocation9 + $0x140] sm:$0xff]   ;;  %v929_v27 = vpop.f32.mrb[17].mxu1 }
 0x279   : > { %v2152_v32 = vpop.eup %2151  ;;  %1870 = vmatprep.subr.bf16.mxu0 %v2115_v3  ;;  %2163 = vpow2.f32 %v728_v8  ;;  %v1211_v39 = vpack.c.bf16 %v2840_v28, %v2838_v24  ;;  %v744_v40 = vmul.f32 %v1631_v50, %v2727_v62  ;;  %v745_v18 = vmul.f32 %v1631_v50, %v2747_v35  ;;  %v2122_v8 = vld [vmem:[#allocation9 + $0x148] sm:$0xff]  }
 0x27a   : > { %v2154_v48 = vpop.eup %2153  ;;  %2165 = vpow2.f32 %v730_v33  ;;  %v2848_v49 = vadd.f32 %v1632_v60, %v742_v53  ;;  %v2850_v52 = vadd.f32 %v1632_v60, %v743_v31  ;;  %v778_v63 = vmul.f32 2.0, %v2704_v43 }
 0x27b   : > { %v2156_v37 = vpop.eup %2155  ;;  %v1085_v56 = vpack.c.bf16 %v2154_v48, %v2152_v32  ;;  %2167 = vpow2.f32 %v732_v20  ;;  %v2853_v58 = vadd.f32 %v1632_v60, %v744_v40  ;;  %v2855_v22 = vadd.f32 %v1632_v60, %v745_v18  ;;  %v2128_v18 = vld [vmem:[#allocation9 + $0x178] sm:$0xff]  }
 0x27c   : > { %1871 = vmatpush3.bf16.msra.mxu0 %v2115_v3  ;;  %v1212_v62 = vpack.c.bf16 %v2850_v52, %v2848_v49  ;;  %v779_v35 = vmul.f32 2.0, %v2716_v51  ;;  %v803_v50 = vsub.f32 %v2674_v26, %v778_v63  ;;  %v786_v21 = vadd.f32 1.0, %v778_v63  ;;  %v2120_v3 = vld [vmem:[#allocation9 + $0x138] sm:$0xff]   ;;  %v1634_v52 = vld [vmem:[#allocation7 + $0x2] ss:$0 sm:$0xff] }
 0x27d   : > { %v2158_v29 = vpop.eup %2157  ;;  %1878 = vmatprep.mubr.bf16.mxu0 %v1085_v56  ;;  %1872 = vmatprep.subr.bf16.mxu0 %v2117_v38  ;;  %v1213_v43 = vpack.c.bf16 %v2855_v22, %v2853_v58  ;;  %v837_v47 = vsub.f32 %v2772_v19, %v2788_v34  ;;  %v838_v9 = vsub.f32 %v2783_v54, %v2797_v59 }
 0x27e   : > { %v2160_v60 = vpop.eup %2159  ;;  %v839_v25 = vsub.f32 %v2150_v30, %v2158_v29  ;;  %v787_v45 = vadd.f32 1.0, %v779_v35  ;;  %v804_v51 = vsub.f32 %v2674_v26, %v779_v35  ;;  %v811_v0 = vand.u32 2147483647, %v803_v50 }
 0x27f   : > { %v840_v61 = vsub.f32 %v2156_v37, %v2160_v60  ;;  %v2868_v1 = vpack.c.bf16 %v838_v9, %v837_v47  ;;  %2169 = vrcp.f32 %v786_v21 }
 0x280   : > { %1873 = vmatpush3.bf16.msra.mxu0 %v2117_v38  ;;  %v812_v44 = vand.u32 2147483647, %v804_v51  ;;  %v819_v55 = vadd.f32 1.0, %v811_v0  ;;  %2171 = vrcp.f32 %v787_v45  ;;  %v2124_v38 = vld [vmem:[#allocation9 + $0x158] sm:$0xff]   ;;  %v938_v45 = vadd.f32 %v1832_v4, %v1634_v52 }
 0x281   : > { %1874 = vmatprep.subr.bf16.mxu0 %v2119_v57  ;;  %v1337_v2 = vpack.c.bf16 %v840_v61, %v839_v25  ;;  %v930_v51 = vadd.f32 %v1634_v52, %v929_v27 }
 0x282   : > { %v2162_v19 = vpop.eup %2161  ;;  %v820_v34 = vadd.f32 1.0, %v812_v44  ;;  %2173 = vrcp.f32 %v819_v55 }
 0x283   : > { %v2164_v54 = vpop.eup %2163  ;;  %1930 = vmatprep.mubr.bf16.mxu1 %v1337_v2 }
 0x284   : > { %v2166_v59 = vpop.eup %2165  ;;  %1875 = vmatpush3.bf16.msra.mxu0 %v2119_v57  ;;  %1931 = vmatmul.mubr.bf16.vlgmr.msra.gmra.mrb[24].mxu1 %v1338_v42  ;;  %v1087_v26 = vpack.c.bf16 %v2164_v54, %v2162_v19  ;;  %2175 = vrcp.f32 %v820_v34  ;;  %v2123_v42 = vld [vmem:[#allocation9 + $0x150] sm:$0xff]  }
 0x285   : > { %v2168_v36 = vpop.eup %2167  ;;  %1876 = vmatprep.subr.bf16.mxu0 %v2120_v3 }
 0x286   : > { %v1088_v5 = vpack.c.bf16 %v2168_v36, %v2166_v59 }
 0x288   : > { %1877 = vmatpush3.bf16.msra.mxu0 %v2120_v3 }
 0x289   : > { %1886 = vmatprep.subr.bf16.mxu0 %v2121_v23  ;;  %v2170_v33 = vpop.eup %2169 }
 0x28a   : > { %v2172_v20 = vpop.eup %2171 }
 0x28b   : > { %1879 = vmatmul.mubr.bf16.vlgmr.msra.gmra.mrb[0].mxu0 %v1086_v11  ;;  %v2127_v11 = vld [vmem:[#allocation9 + $0x170] sm:$0xff]  }
 0x28c   : > { %1882 = vmatprep.mubr.bf16.mxu0 %v1087_v26  ;;  %1887 = vmatpush3.bf16.msra.mxu0 %v2121_v23  ;;  %v2174_v30 = vpop.eup %2173 }
 0x28d   : > { %1888 = vmatprep.subr.bf16.mxu0 %v2122_v8  ;;  %v835_v31 = vsub.f32 %v2170_v33, %v2174_v30 }
 0x28e   : > { %v2176_v53 = vpop.eup %2175 }
 0x28f   : > { %v836_v32 = vsub.f32 %v2172_v20, %v2176_v53 }
 0x290   : > { %1889 = vmatpush3.bf16.msra.mxu0 %v2122_v8 }
 0x291   : > { %1890 = vmatprep.subr.bf16.mxu0 %v2123_v42  ;;  %v1335_v40 = vpack.c.bf16 %v836_v32, %v835_v31 }
 0x293   : > { %1883 = vmatmul.mubr.bf16.gmra.mrb[4].mxu0 %v1088_v5 }
 0x294   : > { %1891 = vmatpush3.bf16.msra.mxu0 %v2123_v42  ;;  %1902 = vmatprep.mubr.bf16.mxu0 %v1210_v41  ;;  %v1833_v41 = vpop.f32.mrb[18].mxu1 }
 0x295   : > { %1892 = vmatprep.subr.bf16.mxu0 %v2124_v38  ;;  %v932_v48 = vpop.f32.mrb[19].mxu1  ;;  %v941_v0 = vadd.f32 %v1833_v41, %v1634_v52 }
 0x296   : > { %v933_v2 = vadd.f32 %v1634_v52, %v932_v48 }
 0x298   : > { %1893 = vmatpush3.bf16.msra.mxu0 %v2124_v38 }
 0x299   : > { %1894 = vmatprep.subr.bf16.mxu0 %v2125_v7 }
 0x29c   : > { %1895 = vmatpush3.bf16.msra.mxu0 %v2125_v7 }
 0x29d   : > { %1896 = vmatprep.subr.bf16.mxu0 %v2126_v46 }
 0x2a0   : > { %1897 = vmatpush3.bf16.msra.mxu0 %v2126_v46 }
 0x2a1   : > { %1898 = vmatprep.subr.bf16.mxu0 %v2127_v11 }
 0x2a4   : > { %1899 = vmatpush3.bf16.msra.mxu0 %v2127_v11 }
 0x2a5   : > { %1900 = vmatprep.subr.bf16.mxu0 %v2128_v18 }
 0x2a8   : > { %1901 = vmatpush3.bf16.msra.mxu0 %v2128_v18 }
 0x2a9   : > { %1910 = vmatprep.subr.bf16.mxu0 %v2623_v6 }
 0x2ab   : > { %1903 = vmatmul.mubr.bf16.vlgmr.msra.gmra.mrb[0].mxu0 %v1211_v39 }
 0x2ac   : > { %1906 = vmatprep.mubr.bf16.mxu0 %v1212_v62  ;;  %1911 = vmatpush3.bf16.msra.mxu0 %v2623_v6  ;;  %v1836_v6 = vpop.f32.mrb[20].mxu1 }
 0x2ad   : > { %1912 = vmatprep.subr.bf16.mxu0 %v2629_v10  ;;  %v945_v24 = vpop.f32.mrb[21].mxu1 }
 0x2ae   : > { %v1837_v28 = vpop.f32.mrb[22].mxu1  ;;  %v946_v63 = vadd.f32 %v1634_v52, %v945_v24 }
 0x2af   : > { %v948_v39 = vpop.f32.mrb[23].mxu1  ;;  %v957_v37 = vadd.f32 %v1837_v28, %v1634_v52 }
 0x2b0   : > { %1913 = vmatpush3.bf16.msra.mxu0 %v2629_v10 }
 0x2b1   : > { %1914 = vmatprep.subr.bf16.mxu0 %v2637_v12 }
 0x2b3   : > { %1907 = vmatmul.mubr.bf16.gmra.mrb[4].mxu0 %v1213_v43 }
 0x2b4   : > { %1915 = vmatpush3.bf16.msra.mxu0 %v2637_v12  ;;  %1926 = vmatprep.mubr.bf16.mxu0 %v1335_v40 }
 0x2b5   : > { %1916 = vmatprep.subr.bf16.mxu0 %v2641_v13 }
 0x2b8   : > { %1917 = vmatpush3.bf16.msra.mxu0 %v2641_v13 }
 0x2b9   : > { %1918 = vmatprep.subr.bf16.mxu0 %v2645_v14 }
 0x2bc   : > { %1919 = vmatpush3.bf16.msra.mxu0 %v2645_v14  ;;  %v954_v14 = vadd.f32 %v1836_v6, %v1634_v52 }
 0x2bd   : > { %1920 = vmatprep.subr.bf16.mxu0 %v2649_v15 }
 0x2c0   : > { %1921 = vmatpush3.bf16.msra.mxu0 %v2649_v15  ;;  %v949_v15 = vadd.f32 %v1634_v52, %v948_v39 }
 0x2c1   : > { %1922 = vmatprep.subr.bf16.mxu0 %v2651_v16 }
 0x2c4   : > { %1923 = vmatpush3.bf16.msra.mxu0 %v2651_v16 }
 0x2c5   : > { %1924 = vmatprep.subr.bf16.mxu0 %v2656_v17 }
 0x2c8   : > { %1925 = vmatpush3.bf16.msra.mxu0 %v2656_v17 }
 0x2cb   : > { %1927 = vmatmul.mubr.bf16.vlgmr.msra.gmra.mrb[0].mxu0 %v2868_v1 }
 0x357   : > { %v1932_v10 = vpop.f32.mrb[24].mxu1 }
 0x358   : > { %v1437_v12 = vpop.f32.mrb[25].mxu1 }
 0x359   : > { %v1933_v13 = vpop.f32.mrb[26].mxu1 }
 0x35a   : > { %v1440_v49 = vpop.f32.mrb[27].mxu1 }
 0x386   : > { %v1908_v56 = vpop.f32.mrb[4].mxu0 }
 0x387   : > { %v1959_v58 = vadd.f32 %v1908_v56, %v954_v14  ;;  %v1312_v22 = vpop.f32.mrb[5].mxu0 }
 0x388   : > { %v1962_v16 = vadd.f32 %v1312_v22, %v946_v63  ;;  %v1909_v62 = vpop.f32.mrb[6].mxu0 }
 0x389   : > { %v1960_v35 = vadd.f32 %v1959_v58, %v1932_v10  ;;  %v1965_v50 = vadd.f32 %v1909_v62, %v957_v37  ;;  %v1315_v17 = vpop.f32.mrb[7].mxu0 }
 0x38a   : > { %v1963_v29 = vadd.f32 %v1962_v16, %v1437_v12  ;;  %v1968_v57 = vadd.f32 %v1315_v17, %v949_v15 }
 0x38b   : > { %v1466_v43 = vmax.f32 %v1960_v35, 0.0  ;;  %v1966_v21 = vadd.f32 %v1965_v50, %v1933_v13 }
 0x38c   : > { %v1464_v47 = vmax.f32 %v1963_v29, 0.0  ;;  %v1969_v9 = vadd.f32 %v1968_v57, %v1440_v49 }
 0x38d   : > { %1474 = vst [vmem:[%s256_s13 + $0x30] sm:$0xff] %v1466_v43  ;;  %v1467_v60 = vmax.f32 %v1966_v21, 0.0 }
 0x38e   : > { %1472 = vst [vmem:[%s256_s13 + $0x20] sm:$0xff] %v1464_v47  ;;  %v1465_v25 = vmax.f32 %v1969_v9, 0.0 }
 0x38f   : > { %1475 = vst [vmem:[%s256_s13 + $0x38] sm:$0xff] %v1467_v60 }
 0x390   : > { %1473 = vst [vmem:[%s256_s13 + $0x28] sm:$0xff] %v1465_v25 }
 0x39e   : > { %v1928_v61 = vpop.f32.mrb[0].mxu0 }
 0x39f   : > { %v1951_v1 = vadd.f32 %v1928_v61, %v938_v45  ;;  %v1421_v44 = vpop.f32.mrb[1].mxu0 }
 0x3a0   : > { %v1953_v3 = vadd.f32 %v1421_v44, %v930_v51  ;;  %v1929_v55 = vpop.f32.mrb[2].mxu0 }
 0x3a1   : > { %v1462_v19 = vmax.f32 %v1951_v1, 0.0  ;;  %v1955_v34 = vadd.f32 %v1929_v55, %v941_v0  ;;  %v1424_v54 = vpop.f32.mrb[3].mxu0 }
 0x3a2   : > { %v1460_v59 = vmax.f32 %v1953_v3, 0.0  ;;  %v1957_v26 = vadd.f32 %v1424_v54, %v933_v2 }
 0x3a3   : > { %1470 = vst [vmem:[%s256_s13 + $0x10] sm:$0xff] %v1462_v19  ;;  %v1463_v36 = vmax.f32 %v1955_v34, 0.0 }
 0x3a4   : > { %1468 = vst [vmem:[%s256_s13] sm:$0xff] %v1460_v59  ;;  %v1461_v23 = vmax.f32 %v1957_v26, 0.0 }
 0x3a5   : > { %1471 = vst [vmem:[%s256_s13 + $0x18] sm:$0xff] %v1463_v36 }
 0x3a6   : > { %1469 = vst [vmem:[%s256_s13 + $0x8] sm:$0xff] %v1461_v23 }
 0x3a7   : > { %2289 = shalt.err (!%p2286_p9)
}
 0x3a8   : > { %s2290_s10 = scalar_lea.hbm %s2908_s28, 1024  ;;  %s2294_s12 = scalar_lea.hbm %s2958_s4, 2048 }
 0x3a9   : > { %p2291_p12 = scmp.ne.s32.totalorder %s2908_s28, %s2290_s10  ;;  %p2295_p4 = scmp.lt.u32.totalorder %s2908_s28, %s2958_s4 }
 0x3aa   : > { %p2296_p8 = scmp.lt.u32.totalorder %s2294_s12, %s2290_s10  ;;  %p2298_p11 = scmp.lt.u32.totalorder %s2290_s10, %s2908_s28 }
 0x3ab   : > { %p2292_p3 = pnand %p2291_p12, %p2975_p0 }
 0x3ac   : > { %p2297_p6 = por %p2296_p8, %p2295_p4 }
 0x3ad   : > { %p2293_p7 = pneg %p2292_p3 }
 0x3ae   : > { %p2299_p1 = por %p2298_p11, %p2297_p6 }
 0x3b0   : > { %p2300_p2 = pnand %p2299_p1, %p2293_p7 }
 0x3b2   : > { %2303 = shalt.err (!%p2300_p2)
}
 0x3b3   : > { %s2361_s13 = smov 128   ;;  %s2362_s30 = smov 8  }
 0x3b4   : > { %2004 = dma.vmem_to_hbm [thread:$0]  (%p2975_p0), %s2910_s6, 1024, %s2908_s28, %s1477_s19, %s2361_s13, %s2361_s13, %s2362_s30  }
 0x3b5 PF: > { %s1505_s7 = sand.u32 1, %s2338_s15   ;;  %p2976_p10 = scmp.ne.s32.totalorder %s2963_s22, 0 }
 0x3b6   : > { %p2977_p5 = scmp.ge.s32.totalorder %s2350_s18, 2  ;;  %s1506_s24 = scalar_lea.sflag [#allocation4], %s1505_s7 }
 0x3b8   : > { %p2021_p13 = pnand %p2977_p5, %p2976_p10 }
 0x3ba   : > { %2333 = dma.done.wait (!%p2021_p13), %s1506_s24, 1024  }
 0x3bb   : > { %2335 = vsyncadd (!%p2021_p13), %s1506_s24, 4294966272  ;;  %p19_p9 = scmp.ge.s32.totalorder %s2517_s25, 4   ;;  %s2978_s15 = smov %s2342_s16 }
 0x3bc   : > { %s2979_s16 = smov %s2346_s17  ;;  %s2980_s17 = smov %s2527_s14 }
 0x3bd   : > { %s2981_s18 = smov %s2517_s25  ;;  %21 = sbr.rel (!%p19_p9) target bundleno = 7 (0x7), region = 94 }
 0x3c4   :  { %1511 = vsyncpa [#allocation3], 1 }
 0x3c5   :  { %1513 = vsyncpa [#allocation3 + $0x1], 1 }
 0x3c6   :  { %1514 = vsyncpa [#allocation8], 1 }
 0x3c7   :  { %1515 = vsyncpa [#allocation4], 1 }
 0x3c8   :  { %1517 = vsyncpa [#allocation4 + $0x1], 1 }
 0x3c9   :  { %1518 = vsyncpa [#allocation5], 1 }
 0x3ca   :  { %1520 = vsyncpa [#allocation5 + $0x1], 1 }

</bundles_post_ra>
